<compile_context>
chip_gen: v6e
topology: v6e:2x2x1
jax: 0.10.0
libtpu: 0.0.40
codegen_flags: <defaults>
</compile_context>

<pallas_src>
import numpy as np
import jax
import jax.numpy as jnp
from jax.experimental import pallas as pl
from jax.experimental.pallas import tpu as pltpu


# ----------------------------------------------------------------------------
# Kernel: one grid step = one lane tile of the concatenated generator signal.
# ----------------------------------------------------------------------------
def _joint_loss_kernel(w_cat_ref, bias_ref, ops_ref, spk_ref, wmask_ref,
                       out_ref, acc_ref):
    """gen = w_cat @ ops_tile + bias ; Poisson-loss partial sum into acc.

    w_cat_ref : (1, Kc)      f32       VMEM (same resident block every step)
    bias_ref  : (1, 1)       f32       VMEM
    ops_ref   : (Kc, tile)   f32/bf16  VMEM (movie + flashed operand slab)
    spk_ref   : (1, tile)    f32/bf16  VMEM (spikes shifted by one bin)
    wmask_ref : (1, tile)    f32       VMEM (per-element weight, 0 = invalid)
    out_ref   : (1, 8, 128)  f32       VMEM (per-parallel-group partial sum)
    acc_ref   : (1, 1)       f32       VMEM scratch accumulator
    """
    s = pl.program_id(1)

    @pl.when(s == 0)
    def _():
        acc_ref[...] = jnp.zeros_like(acc_ref)

    w = wmask_ref[...]                                          # (1, tile) f32
    gen = jnp.dot(w_cat_ref[...], ops_ref[...].astype(jnp.float32),
                  preferred_element_type=jnp.float32) + bias_ref[...]
    # Mask BEFORE exp: excluded/padded bins never see exp(huge) (no inf*0 NaN).
    gen = jnp.where(w > 0.0, gen, 0.0)
    spk = spk_ref[...].astype(jnp.float32)
    acc_ref[...] += jnp.sum(w * (jnp.exp(gen) - spk * gen), keepdims=True)

    @pl.when(s == pl.num_programs(1) - 1)
    def _():
        # Lane/sublane-aligned (1,8,128) writeout; host reads element [., 0, 0].
        out_ref[...] = jnp.zeros(out_ref.shape, jnp.float32) + acc_ref[...]


# ----------------------------------------------------------------------------
# One-time host-side data layout (cache the result across optimizer steps).
# ----------------------------------------------------------------------------
def prepare_joint_glm_data(filt_multimovie, cell_spike_multibin,
                           filt_feedback_multibins,
                           flashed_spat_filt, flashed_time_basis_filt,
                           flashed_binned_spikes_cell,
                           flashed_filtered_feedback,
                           flashed_weight=1.0, data_dtype=jnp.bfloat16,
                           lane_tile=2048, num_parallel=2):
    assert lane_tile % 128 == 0, "lane_tile must be a multiple of 128"
    f32 = jnp.float32
    Kt = int(flashed_time_basis_filt.shape[0])
    Kf = int(flashed_filtered_feedback.shape[1])
    Kc = Kt + Kf
    Kc_pad = ((Kc + 7) // 8) * 8                       # sublane alignment
    M = len(filt_multimovie)

    ops_blocks, spk_blocks, w_blocks = [], [], []

    # --- multimovie: per-movie [filt_stim; filt_fb] stacked along lanes ---
    for fs, fb, sp in zip(filt_multimovie, filt_feedback_multibins,
                          cell_spike_multibin):
        T = int(fs.shape[1])
        ops_blocks.append(jnp.concatenate([jnp.asarray(fs, f32),
                                           jnp.asarray(fb, f32)], axis=0))
        spk_blocks.append(jnp.pad(jnp.asarray(sp, f32)[1:], (0, 1)))
        wb = np.zeros((T,), np.float32)
        wb[:T - 1] = 1.0 / (M * (T - 1))               # mean over movies+bins
        w_blocks.append(wb)

    # --- flashed: fold spat*timecourse and feedback into the same slab ---
    N, _, Tf = (int(d) for d in flashed_filtered_feedback.shape)
    spat = jnp.asarray(flashed_spat_filt, f32)                       # (N,)
    timeb = jnp.asarray(flashed_time_basis_filt, f32)                # (Kt, Tf)
    stim_rows = (spat[None, :, None] * timeb[:, None, :]).reshape(Kt, N * Tf)
    fb_rows = jnp.transpose(jnp.asarray(flashed_filtered_feedback, f32),
                            (1, 0, 2)).reshape(Kf, N * Tf)
    ops_blocks.append(jnp.concatenate([stim_rows, fb_rows], axis=0))
    spk_blocks.append(jnp.pad(
        jnp.asarray(flashed_binned_spikes_cell, f32)[:, 1:],
        ((0, 0), (0, 1))).reshape(N * Tf))
    wf = np.zeros((N, Tf), np.float32)
    wf[:, :Tf - 1] = float(flashed_weight) / (N * (Tf - 1))
    w_blocks.append(wf.reshape(N * Tf))

    ops = jnp.concatenate(ops_blocks, axis=1)          # (Kc, Lc) f32
    spk = jnp.concatenate(spk_blocks)                  # (Lc,)
    wmask = np.concatenate(w_blocks)                   # (Lc,) f32

    # --- pad the lane axis so the 2-D grid divides it evenly ---
    Lc = int(ops.shape[1])
    chunk = lane_tile * num_parallel
    Lpad = ((Lc + chunk - 1) // chunk) * chunk
    ops = jnp.pad(ops, ((0, Kc_pad - Kc), (0, Lpad - Lc))).astype(data_dtype)
    spk = jnp.pad(spk, (0, Lpad - Lc)).astype(data_dtype).reshape(1, Lpad)
    wmask = jnp.asarray(np.pad(wmask, (0, Lpad - Lc)).reshape(1, Lpad))

    return {"ops": ops, "spk": spk, "wmask": wmask,
            "lane_tile": lane_tile, "num_parallel": num_parallel}


# ----------------------------------------------------------------------------
# Per-optimizer-step forward (jit with static lane_tile / num_parallel).
# ----------------------------------------------------------------------------
def joint_glm_loss(feedback_w, stim_time_w, bias, ops, spk, wmask,
                   lane_tile, num_parallel):
    f32 = jnp.float32
    Kc_pad, Lpad = ops.shape
    G = num_parallel
    steps = Lpad // (G * lane_tile)

    w_cat = jnp.concatenate([stim_time_w, feedback_w], axis=1).astype(f32)
    w_cat = jnp.pad(w_cat, ((0, 0), (0, Kc_pad - w_cat.shape[1])))
    bias11 = jnp.reshape(bias, (1, 1)).astype(f32)

    def lane_block(g, s):
        return (0, g * steps + s)

    out = pl.pallas_call(
        _joint_loss_kernel,
        out_shape=jax.ShapeDtypeStruct((G, 8, 128), f32),
        grid_spec=pltpu.PrefetchScalarGridSpec(
            num_scalar_prefetch=0,
            grid=(G, steps),
            in_specs=[
                pl.BlockSpec((1, Kc_pad), lambda g, s: (0, 0)),      # weights
                pl.BlockSpec((1, 1), lambda g, s: (0, 0)),           # bias
                pl.BlockSpec((Kc_pad, lane_tile), lane_block),       # operand
                pl.BlockSpec((1, lane_tile), lane_block),            # spikes
                pl.BlockSpec((1, lane_tile), lane_block),            # weights/mask
            ],
            out_specs=pl.BlockSpec((1, 8, 128), lambda g, s: (g, 0, 0)),
            scratch_shapes=[pltpu.VMEM((1, 1), f32)],
        ),
        compiler_params=pltpu.CompilerParams(
            dimension_semantics=("parallel", "arbitrary")),
        cost_estimate=pl.CostEstimate(
            flops=2 * int(Kc_pad) * int(Lpad) + 8 * int(Lpad),
            transcendentals=int(Lpad),
            bytes_accessed=(int(ops.size) * ops.dtype.itemsize
                            + int(spk.size) * spk.dtype.itemsize
                            + int(wmask.size) * 4 + G * 8 * 128 * 4)),
    )(w_cat, bias11, ops, spk, wmask)

    # Per-parallel-group partial sums -> total loss (trivial follow-up add).
    return jnp.sum(out[:, 0, 0])


# ----------------------------------------------------------------------------
# Pure-JAX reference (mirrors the PyTorch _eval_loss with Poisson loss)
# ----------------------------------------------------------------------------
def _poisson_loss(gen, spikes):
    return jnp.mean(jnp.exp(gen) - spikes * gen)


def ref_forward(feedback_w, stim_time_w, bias,
                filt_multimovie, cell_spike_multibin, filt_feedback_multibins,
                flashed_spat_filt, flashed_time_basis_filt,
                flashed_binned_spikes_cell, flashed_filtered_feedback,
                flashed_weight=1.0):
    losses = []
    for fs, ff, sp in zip(filt_multimovie, filt_feedback_multibins,
                          cell_spike_multibin):
        gen = (stim_time_w @ fs)[0] + (feedback_w @ ff)[0] + bias[0]
        losses.append(_poisson_loss(gen[:-1], sp[1:]))
    movie_loss = jnp.mean(jnp.stack(losses))

    time_applied = stim_time_w @ flashed_time_basis_filt           # (1, T)
    stim_contrib = flashed_spat_filt[:, None] * time_applied       # (N, T)
    fb_contrib = jnp.einsum('ok,nkt->nt', feedback_w,
                            flashed_filtered_feedback)             # (N, T)
    gen_f = bias[0] + stim_contrib + fb_contrib
    flashed_loss = _poisson_loss(gen_f[:, :-1],
                                 flashed_binned_spikes_cell[:, 1:])
    return movie_loss + flashed_loss * flashed_weight


# ----------------------------------------------------------------------------
if __name__ == "__main__":
    key = jax.random.PRNGKey(0)
    keys = jax.random.split(key, 20)

    Kt, Kf = 8, 8                     # n_basis_stim_time, n_basis_feedback
    movie_lens = [96, 128, 80]        # 3 movies with ragged lengths
    N_flash, T_flash = 4, 64          # flashed trials x time bins
    flashed_weight = 0.75

    feedback_w = jax.random.uniform(keys[0], (1, Kf), jnp.float32, -0.01, 0.01)
    stim_time_w = jax.random.uniform(keys[1], (1, Kt), jnp.float32, -0.01, 0.01)
    bias = jax.random.uniform(keys[2], (1,), jnp.float32, -0.01, 0.01)

    filt_multimovie, filt_feedback_multibins, cell_spike_multibin = [], [], []
    for m, T in enumerate(movie_lens):
        filt_multimovie.append(
            jax.random.normal(keys[3 + 3 * m], (Kt, T), jnp.float32))
        filt_feedback_multibins.append(
            jax.random.normal(keys[4 + 3 * m], (Kf, T), jnp.float32))
        cell_spike_multibin.append(
            jax.random.poisson(keys[5 + 3 * m], 0.5, (T,)).astype(jnp.float32))

    flashed_spat_filt = jax.random.normal(keys[13], (N_flash,), jnp.float32)
    flashed_time_basis_filt = jax.random.normal(keys[14], (Kt, T_flash),
                                                jnp.float32)
    flashed_binned_spikes = jax.random.poisson(
        keys[15], 0.5, (N_flash, T_flash)).astype(jnp.float32)
    flashed_filtered_feedback = jax.random.normal(
        keys[16], (N_flash, Kf, T_flash), jnp.float32)

    ref = ref_forward(feedback_w, stim_time_w, bias,
                      filt_multimovie, cell_spike_multibin,
                      filt_feedback_multibins,
                      flashed_spat_filt, flashed_time_basis_filt,
                      flashed_binned_spikes, flashed_filtered_feedback,
                      flashed_weight=flashed_weight)

    fwd = jax.jit(joint_glm_loss, static_argnames=("lane_tile", "num_parallel"))

    # --- f32 data path: tight check against the reference ---
    prep32 = prepare_joint_glm_data(
        filt_multimovie, cell_spike_multibin, filt_feedback_multibins,
        flashed_spat_filt, flashed_time_basis_filt,
        flashed_binned_spikes, flashed_filtered_feedback,
        flashed_weight=flashed_weight, data_dtype=jnp.float32,
        lane_tile=256, num_parallel=2)
    loss32 = jax.block_until_ready(
        fwd(feedback_w, stim_time_w, bias,
            prep32["ops"], prep32["spk"], prep32["wmask"],
            lane_tile=prep32["lane_tile"],
            num_parallel=prep32["num_parallel"]))
    assert jnp.allclose(loss32, ref, rtol=1e-5, atol=1e-5), (loss32, ref)

    # --- bf16 data path (halved HBM traffic): loose check ---
    prep16 = prepare_joint_glm_data(
        filt_multimovie, cell_spike_multibin, filt_feedback_multibins,
        flashed_spat_filt, flashed_time_basis_filt,
        flashed_binned_spikes, flashed_filtered_feedback,
        flashed_weight=flashed_weight, data_dtype=jnp.bfloat16,
        lane_tile=256, num_parallel=2)
    loss16 = jax.block_until_ready(
        fwd(feedback_w, stim_time_w, bias,
            prep16["ops"], prep16["spk"], prep16["wmask"],
            lane_tile=prep16["lane_tile"],
            num_parallel=prep16["num_parallel"]))
    assert jnp.allclose(loss16, ref, rtol=1e-2, atol=1e-2), (loss16, ref)

    print("KERNEL_OK")
</pallas_src>

<mosaic_0001>
module attributes {stable_mosaic.version = 11 : i64} {
  func.func @_joint_loss_kernel(%arg0: i32, %arg1: i32, %arg2: memref<1x16xf32, #tpu.memory_space<vmem>>, %arg3: memref<1x1xf32, #tpu.memory_space<vmem>>, %arg4: memref<16x256xf32, #tpu.memory_space<vmem>>, %arg5: memref<1x256xf32, #tpu.memory_space<vmem>>, %arg6: memref<1x256xf32, #tpu.memory_space<vmem>>, %arg7: memref<1x8x128xf32, #tpu.memory_space<vmem>>, %arg8: memref<1x1xf32, #tpu.memory_space<vmem>>) attributes {dimension_semantics = [#tpu.dimension_semantics<parallel>, #tpu.dimension_semantics<arbitrary>], iteration_bounds = array<i64: 2, 2>, scalar_prefetch = 0 : i64, scratch_operands = 1 : i64, tpu.core_type = #tpu.core_type<tc>, window_params = [{pipeline_mode = #tpu.pipeline_mode<synchronous>, transform_indices = @transform_0, window_bounds = array<i64: 1, 16>}, {pipeline_mode = #tpu.pipeline_mode<synchronous>, transform_indices = @transform_1, window_bounds = array<i64: 1, 1>}, {transform_indices = @transform_2, window_bounds = array<i64: 16, 256>}, {transform_indices = @transform_3, window_bounds = array<i64: 1, 256>}, {transform_indices = @transform_4, window_bounds = array<i64: 1, 256>}, {transform_indices = @transform_5, window_bounds = array<i64: 1, 8, 128>}]} {
    %c0_i32 = arith.constant 0 : i32
    %0 = arith.cmpi eq, %arg1, %c0_i32 : i32
    %1 = arith.extui %0 : i1 to i32
    %c0_i32_0 = arith.constant 0 : i32
    %2 = arith.cmpi ne, %1, %c0_i32_0 : i32
    scf.if %2 {
      %cst_18 = arith.constant 0.000000e+00 : f32
      %30 = vector.broadcast %cst_18 : f32 to vector<1x1xf32>
      %c0_19 = arith.constant 0 : index
      %c0_20 = arith.constant 0 : index
      %31 = vector.load %arg8[%c0_19, %c0_20] : memref<1x1xf32, #tpu.memory_space<vmem>>, vector<1x1xf32>
      tpu.vector_store %arg8[%c0_19, %c0_20], %30 {strides = array<i32>} : memref<1x1xf32, #tpu.memory_space<vmem>>, vector<1x1xf32>,
    } else {
    }
    %c0 = arith.constant 0 : index
    %c0_1 = arith.constant 0 : index
    %3 = vector.load %arg6[%c0, %c0_1] : memref<1x256xf32, #tpu.memory_space<vmem>>, vector<1x256xf32>
    %c0_2 = arith.constant 0 : index
    %c0_3 = arith.constant 0 : index
    %4 = vector.load %arg2[%c0_2, %c0_3] : memref<1x16xf32, #tpu.memory_space<vmem>>, vector<1x16xf32>
    %c0_4 = arith.constant 0 : index
    %c0_5 = arith.constant 0 : index
    %5 = vector.load %arg4[%c0_4, %c0_5] : memref<16x256xf32, #tpu.memory_space<vmem>>, vector<16x256xf32>
    %cst = arith.constant dense<0.000000e+00> : vector<1x256xf32>
    %6 = tpu.matmul %4, %5, %cst {dimension_numbers = #tpu.dot_dimension_numbers<[1], [0], [0], [1], [0, 0, 1, 1], [], []>} : vector<1x16xf32>, vector<16x256xf32>, vector<1x256xf32> -> vector<1x256xf32>
    %c0_6 = arith.constant 0 : index
    %c0_7 = arith.constant 0 : index
    %7 = vector.load %arg3[%c0_6, %c0_7] : memref<1x1xf32, #tpu.memory_space<vmem>>, vector<1x1xf32>
    %8 = vector.broadcast %7 : vector<1x1xf32> to vector<1x256xf32>
    %9 = arith.addf %6, %8 : vector<1x256xf32>
    %cst_8 = arith.constant 0.000000e+00 : f32
    %10 = vector.broadcast %cst_8 : f32 to vector<1x256xf32>
    %11 = arith.cmpf ogt, %3, %10 : vector<1x256xf32>
    %cst_9 = arith.constant 0.000000e+00 : f32
    %12 = vector.broadcast %cst_9 : f32 to vector<1x256xf32>
    %13 = arith.select %11, %9, %12 : vector<1x256xi1>, vector<1x256xf32>
    %c0_10 = arith.constant 0 : index
    %c0_11 = arith.constant 0 : index
    %14 = vector.load %arg5[%c0_10, %c0_11] : memref<1x256xf32, #tpu.memory_space<vmem>>, vector<1x256xf32>
    %c0_12 = arith.constant 0 : index
    %c0_13 = arith.constant 0 : index
    %15 = vector.load %arg8[%c0_12, %c0_13] : memref<1x1xf32, #tpu.memory_space<vmem>>, vector<1x1xf32>
    %16 = math.exp %13 : vector<1x256xf32>
    %17 = arith.mulf %14, %13 : vector<1x256xf32>
    %18 = arith.subf %16, %17 : vector<1x256xf32>
    %19 = arith.mulf %3, %18 : vector<1x256xf32>
    %20 = vector.shape_cast %19 : vector<1x256xf32> to vector<1x1x256xf32>
    %cst_14 = arith.constant dense<0.000000e+00> : vector<1xf32>
    %21 = vector.multi_reduction <add>, %20, %cst_14 [1, 2] : vector<1x1x256xf32> to vector<1xf32>
    %22 = vector.shape_cast %21 : vector<1xf32> to vector<1x1x1xf32>
    %23 = vector.extract %22[0, 0, 0] : f32 from vector<1x1x1xf32>
    %24 = vector.broadcast %23 : f32 to vector<1x1xf32>
    %25 = arith.addf %15, %24 : vector<1x1xf32>
    %c0_15 = arith.constant 0 : index
    %c0_16 = arith.constant 0 : index
    %26 = vector.load %arg8[%c0_15, %c0_16] : memref<1x1xf32, #tpu.memory_space<vmem>>, vector<1x1xf32>
    tpu.vector_store %arg8[%c0_15, %c0_16], %25 {strides = array<i32>} : memref<1x1xf32, #tpu.memory_space<vmem>>, vector<1x1xf32>,
    %c1_i32 = arith.constant 1 : i32
    %27 = arith.cmpi eq, %arg1, %c1_i32 : i32
    %28 = arith.extui %27 : i1 to i32
    %c0_i32_17 = arith.constant 0 : i32
    %29 = arith.cmpi ne, %28, %c0_i32_17 : i32
    scf.if %29 {
      %cst_18 = arith.constant 0.000000e+00 : f32
      %30 = vector.broadcast %cst_18 : f32 to vector<1x8x128xf32>
      %c0_19 = arith.constant 0 : index
      %c0_20 = arith.constant 0 : index
      %31 = vector.load %arg8[%c0_19, %c0_20] : memref<1x1xf32, #tpu.memory_space<vmem>>, vector<1x1xf32>
      %32 = vector.shape_cast %31 : vector<1x1xf32> to vector<1x1x1xf32>
      %33 = vector.broadcast %32 : vector<1x1x1xf32> to vector<1x8x128xf32>
      %34 = arith.addf %30, %33 : vector<1x8x128xf32>
      %c0_21 = arith.constant 0 : index
      %c0_22 = arith.constant 0 : index
      %c0_23 = arith.constant 0 : index
      %35 = vector.load %arg7[%c0_21, %c0_22, %c0_23] : memref<1x8x128xf32, #tpu.memory_space<vmem>>, vector<1x8x128xf32>
      tpu.vector_store %arg7[%c0_21, %c0_22, %c0_23], %34 {strides = array<i32>} : memref<1x8x128xf32, #tpu.memory_space<vmem>>, vector<1x8x128xf32>,
    } else {
    }
    return
  }
  func.func @transform_0(%arg0: i32, %arg1: i32) -> (i32, i32) {
    %c0_i32 = arith.constant 0 : i32
    %c0_i32_0 = arith.constant 0 : i32
    %c0_i32_1 = arith.constant 0 : i32
    return %c0_i32, %c0_i32_0 : i32, i32
  }
  func.func @transform_1(%arg0: i32, %arg1: i32) -> (i32, i32) {
    %c0_i32 = arith.constant 0 : i32
    %c0_i32_0 = arith.constant 0 : i32
    %c0_i32_1 = arith.constant 0 : i32
    return %c0_i32, %c0_i32_0 : i32, i32
  }
  func.func @transform_2(%arg0: i32, %arg1: i32) -> (i32, i32) {
    %c2_i32 = arith.constant 2 : i32
    %0 = arith.muli %arg0, %c2_i32 : i32
    %1 = arith.addi %0, %arg1 : i32
    %c0_i32 = arith.constant 0 : i32
    %c0_i32_0 = arith.constant 0 : i32
    return %c0_i32, %1 : i32, i32
  }
  func.func @transform_3(%arg0: i32, %arg1: i32) -> (i32, i32) {
    %c2_i32 = arith.constant 2 : i32
    %0 = arith.muli %arg0, %c2_i32 : i32
    %1 = arith.addi %0, %arg1 : i32
    %c0_i32 = arith.constant 0 : i32
    %c0_i32_0 = arith.constant 0 : i32
    return %c0_i32, %1 : i32, i32
  }
  func.func @transform_4(%arg0: i32, %arg1: i32) -> (i32, i32) {
    %c2_i32 = arith.constant 2 : i32
    %0 = arith.muli %arg0, %c2_i32 : i32
    %1 = arith.addi %0, %arg1 : i32
    %c0_i32 = arith.constant 0 : i32
    %c0_i32_0 = arith.constant 0 : i32
    return %c0_i32, %1 : i32, i32
  }
  func.func @transform_5(%arg0: i32, %arg1: i32) -> (i32, i32, i32) {
    %c0_i32 = arith.constant 0 : i32
    %c0_i32_0 = arith.constant 0 : i32
    %c0_i32_1 = arith.constant 0 : i32
    return %arg0, %c0_i32, %c0_i32_0 : i32, i32, i32
  }
}

</mosaic_0001>

<bundles_post_ra>
// kernel: joint_glm_loss.1
= control target key start
LH: loop header
LB: loop body
LE: loop exit
PB: predicated region body
PF: predicated region fallthrough
CT: control target
= control target key end

     0   :  { %s1094_s0 = inlined_call_operand.vmem [shape: f32[1,16], index: 0, kind: input, shape index: {}]   ;;  %s1095_s1 = inlined_call_operand.<no memory space> [shape: f32[1,1], index: 1, kind: input, shape index: {}]   ;;  %s1096_s2 = inlined_call_operand.hbm [shape: f32[16,1024], index: 2, kind: input, shape index: {}]   ;;  %s1097_s3 = inlined_call_operand.vmem [shape: f32[1,1024], index: 3, kind: input, shape index: {}]   ;;  %s1098_s4 = inlined_call_operand.hbm [shape: f32[1,1024], index: 4, kind: input, shape index: {}]   ;;  %s1099_s5 = inlined_call_operand.vmem [shape: f32[2,8,128], index: 5, kind: output, shape index: {}]  }
   0x1   :  { %1103 = sst [smem:[#allocation13_spill]] %s1096_s2  ;;  %v10_v0 = vstv %s1095_s1 }
   0x2   :  { %11 = vst [vmem:[#allocation3] sm:$0x1] %v10_v0 }
   0x3   :  { %12 = vsyncpa [#allocation5], 0 }
   0x4   :  { %14 = vsyncpa [#allocation5 + $0x1], 0 }
   0x5   :  { %15 = vsyncpa [#allocation7], 0 }
   0x6   :  { %17 = vsyncpa [#allocation7 + $0x1], 0  ;;  %s919_s20 = smov 0   ;;  %s921_s21 = smov 0  }
   0x7   :  { %s923_s22 = smov 0   ;;  %s925_s23 = smov 0  }
   0x8   :  { %s927_s24 = smov 0   ;;  %s929_s25 = smov 0  }
   0x9   :  { %s931_s26 = smov 0   ;;  %s933_s1 = smov 0  }
   0xa LB: > { %1104 = sst [smem:[#allocation10_spill]] %s870_s26  ;;  %s626_s27 = sadd.s32 4294967295, %s874_s1   ;;  %s874_s1 = sphi %s933_s1, %s23_s1   ;;  %s870_s26 = sphi %s931_s26, %s1114_s26   ;;  %s866_s25 = sphi %s929_s25, %s1119_s25   ;;  %s862_s24 = sphi %s927_s24, %s1112_s24   ;;  %s858_s23 = sphi %s925_s23, %s1118_s23   ;;  %s854_s22 = sphi %s923_s22, %s1117_s22   ;;  %s850_s21 = sphi %s921_s21, %s1116_s21   ;;  %s846_s20 = sphi %s919_s20, %s1115_s20  }
   0xb   : > { %s32_s28 = sadd.s32 1, %s866_s25  ;;  %s35_s29 = sadd.s32 1, %s870_s26 }
   0xc   : > { %p33_p0 = scmp.ge.s32.totalorder %s32_s28, 2  ;;  %s628_s30 = sshll.u32 %s870_s26, 1 }
   0xd   : > { %s88_s6 = sadd.s32 1, %s854_s22  ;;  %s966_s7 = sadd.s32 %s866_s25, %s628_s30 }
   0xe   : > { %s1121_s28 = smov (%p33_p0, %s32_s28), 0  ;;  %s1123_s29 = smov (!%p33_p0, %s35_s29), %s870_s26 }
   0xf   : > { %1105 = sst [smem:[#allocation11_spill]] %s1121_s28  ;;  %p95_p1 = scmp.ne.s32.totalorder %s854_s22, %s850_s21 }
  0x10   : > { %p37_p2 = scmp.ge.s32.totalorder %s1123_s29, 2  ;;  %p96_p3 = scmp.eq.s32.totalorder %s874_s1, 0 }
  0x11   : > { %p101_p4 = scmp.ne.s32.totalorder %s850_s21, %s846_s20  ;;  %p102_p5 = scmp.eq.s32.totalorder %s626_s27, 0 }
  0x12   : > { %s1125_s29 = smov (%p37_p2, %s1123_s29), 0  ;;  %p974_p6 = por %p96_p3, %p95_p1 }
  0x13   : > { %1106 = sst [smem:[#allocation12_spill]] %s1125_s29  ;;  %p978_p7 = por %p102_p5, %p101_p4 }
  0x14   : > { %s629_s10 = sshll.u32 %s1125_s29, 1  ;;  %p671_p8 = scmp.lt.s32.totalorder %s874_s1, 4 }
  0x15   : > { %s84_s11 = sadd.s32 %s629_s10, %s1121_s28  ;;  %s987_s13 = sand.u32 1, %s854_s22  }
  0x16   : > { %s85_s12 = ssub.s32 %s966_s7, %s84_s11  ;;  %s636_s14 = sshll.u32 %s987_s13, 5 }
  0x17   : > { %p86_p9 = scmp.eq.s32.totalorder %s85_s12, 0  ;;  %s656_s15 = sshll.u32 %s966_s7, 8 }
  0x18   : > { %s1109_s2 = sld [smem:[#allocation13_spill]]  ;;  %s221_s20 = scalar_lea.vmem [#allocation4], %s636_s14 }
  0x19   : > { %s992_s16 = scalar_select %p86_p9, %s854_s22, %s88_s6  }
  0x1a   : > { %s230_s27 = sshll.u32 %s221_s20, 4  ;;  %p999_p10 = pnand %p671_p8, %p974_p6  ;;  %s231_s27 = int_to_ptr.vmem [resolvable:$true] %s230_s27 }
  0x1b   : > { %p644_p11 = scmp.ge.s32.totalorder %s874_s1, 1  ;;  %s218_s10 = scalar_lea.sflag [#allocation5], %s987_s13 }
  0x1c   : > { %p750_p12 = pneg %p999_p10  ;;  %s761_s6 = scalar_lea.vmem %s231_s27, 512 }
  0x1d   : > { %p762_p13 = scmp.ne.s32.totalorder %s231_s27, %s761_s6  ;;  %s876_s11 = smov [#allocation4]  }
  0x1e   : > { %s229_s19 = scalar_lea.hbm %s1109_s2, %s656_s15  ;;  %s766_s12 = sshll.u32 %s876_s11, 4  ;;  %s767_s12 = int_to_ptr.vmem [resolvable:$false] %s766_s12 }
  0x1f   : > { %p764_p0 = pnand %p762_p13, %p750_p12  ;;  %s768_s8 = scalar_lea.vmem %s767_s12, 1024 }
  0x20   : > { %p769_p2 = scmp.lt.s32.totalorder %s231_s27, %s767_s12  ;;  %p770_p3 = scmp.lt.s32.totalorder %s768_s8, %s761_s6 }
  0x21   : > { %p765_p1 = pneg %p764_p0 }
  0x22   : > { %p771_p4 = por %p770_p3, %p769_p2 }
  0x24   : > { %p772_p5 = pnand %p771_p4, %p765_p1 }
  0x26   : > { %775 = shalt.err (!%p772_p5)
}
  0x27   : > { %s877_s14 = smov 1024   ;;  %s878_s15 = smov 256  }
  0x28   : > { %s879_s17 = smov 16   ;;  %p271_p6 = scmp.lt.s32.totalorder %s874_s1, 5 }
  0x29   : > { %667 = dma.hbm_to_vmem [thread:$0]  (!%p999_p10), %s229_s19, 512, %s231_s27, %s218_s10, %s877_s14, %s878_s15, %s879_s17  }
  0x2a   : > { %s640_s18 = sshll.u32 %s987_s13, 1  ;;  %s657_s20 = sshll.u32 %s966_s7, 5 }
  0x2b   : > { %p1017_p8 = pnand %p644_p11, %p271_p6  ;;  %s264_s8 = scalar_lea.hbm %s1098_s4, %s657_s20 }
  0x2c   : > { %s256_s2 = scalar_lea.vmem [#allocation6], %s640_s18  ;;  %s253_s28 = scalar_lea.sflag [#allocation7], %s987_s13 }
  0x2d   : > { %s266_s29 = sshll.u32 %s256_s2, 4  ;;  %s880_s7 = smov [#allocation6]   ;;  %s267_s29 = int_to_ptr.vmem [resolvable:$true] %s266_s29 }
  0x2e   : > { %s789_s26 = scalar_lea.vmem %s267_s29, 32  ;;  %s794_s19 = sshll.u32 %s880_s7, 4  ;;  %s795_s19 = int_to_ptr.vmem [resolvable:$false] %s794_s19 }
  0x2f   : > { %p790_p9 = scmp.ne.s32.totalorder %s267_s29, %s789_s26  ;;  %s796_s27 = scalar_lea.vmem %s795_s19, 64 }
  0x30   : > { %p797_p11 = scmp.lt.s32.totalorder %s267_s29, %s795_s19  ;;  %p798_p1 = scmp.lt.s32.totalorder %s796_s27, %s789_s26 }
  0x31   : > { %p792_p13 = pnand %p790_p9, %p750_p12 }
  0x32   : > { %p799_p2 = por %p798_p1, %p797_p11 }
  0x33   : > { %p793_p0 = pneg %p792_p13 }
  0x35   : > { %p800_p3 = pnand %p799_p2, %p793_p0 }
  0x37   : > { %803 = shalt.err (!%p800_p3)
}
  0x38   : > { %670 = dma.hbm_to_vmem [thread:$0]  (!%p999_p10), %s264_s8, 32, %s267_s29, %s253_s28  }
  0x39   : > { %275 = sbr.rel (%p1017_p8) target bundleno = 647 (0x287), region = 40  ;;  %s277_s2 = sand.u32 (!%p1017_p8), 1, %s850_s21  }
  0x3a   : > { %s645_s13 = sshll.u32 (!%p1017_p8), %s277_s2, 5  ;;  %s278_s10 = scalar_lea.sflag (!%p1017_p8), [#allocation5], %s277_s2 }
  0x3b   : > { %s281_s14 = scalar_lea.vmem (!%p1017_p8), [#allocation4], %s645_s13 }
  0x3e   : > { %837 = dma.done.wait (%p978_p7), %s278_s10, 512  }
  0x3f   : > { %839 = vsyncadd (%p978_p7), %s278_s10, 4294966784  ;;  %s646_s26 = sshll.u32 %s277_s2, 1  ;;  %s287_s15 = scalar_lea.sflag [#allocation7], %s277_s2 }
  0x40   : > { %s1037_s17 = scalar_lea.vmem [#allocation6], %s646_s26 }
  0x41   : > { %841 = dma.done.wait (%p978_p7), %s287_s15, 32  }
  0x42   : > { %843 = vsyncadd (%p978_p7), %s287_s15, 4294967264  ;;  %s647_s28 = sshll.u32 %s862_s24, 1  ;;  %p342_p10 = scmp.lt.s32.totalorder %s862_s24, 1 }
  0x43   : > { %s331_s29 = sadd.s32 %s858_s23, %s647_s28  ;;  %p650_p7 = scmp.ne.s32.totalorder %s858_s23, 0 }
  0x44   : > { %s648_s30 = sshll.u32 %s331_s29, 1  ;;  %s1127_s24 = smov (!%p342_p10, %s862_s24), 1 }
  0x45   : > { %p333_p12 = scmp.lt.s32.totalorder %s648_s30, 7  ;;  %s649_s18 = sshll.u32 %s1127_s24, 3 }
  0x46   : > { %s1056_s8 = scalar_lea.vmem %s1099_s5, %s649_s18  ;;  %349 = sbr.rel (%p650_p7) target bundleno = 77 (0x4d), region = 52 }
  0x47   : > { %s1129_s30 = smov (!%p333_p12, %s648_s30), 7 }
  0x48   : > { %s335_s11 = scalar_lea.vmem %s1097_s3, %s1129_s30 }
  0x4b   : > { %vm350_vm0 = vcmask 0   ;;  %v881_v1 = vmov 0.0  }
  0x4c   : > { %351 = vst.msk [vmem:[#allocation2] sm:$0x1] %vm350_vm0, %v881_v1 }
  0x4d PF: > { %v357_v2 = vld [vmem:[%s281_s14 + $0x18] sm:$0xff]  ;;  %v356_v3 = vld [vmem:[%s281_s14 + $0x10] sm:$0xff]  ;;  %v355_v4 = vld [vmem:[%s281_s14 + $0x8] sm:$0xff]  ;;  %v882_v6 = vmov 0.0   ;;  %vm368_vm1 = vcmask 130048   ;;  %v883_v9 = vmov 0   ;;  %v364_v10 = vlaneseq }
  0x4e   : > { %400 = vmatprep.subr.mxu0 %v357_v2  ;;  %v354_v5 = vld [vmem:[%s281_s14] sm:$0xff]  ;;  %436 = vmatprep.mubr.f32.mxu0 %v882_v6  ;;  %v358_v7 = vld [vmem:[#allocation3] sm:$0x1]  ;;  %v353_v8 = vld [vmem:[%s1094_s0] sm:$0x1]  ;;  %vm481_vm3 = vcmask 1040384  }
  0x4f   : > { %401 = vmatpush1.msra.mxu0 %v356_v3  ;;  %744 = vset.pattern.permute.xlu0 %v883_v9  ;;  %v365_v11 = vshrl.u32 %v364_v10, 7  ;;  %v884_v13 = vmov 1966171168   ;;  %v352_v24 = vld [vmem:[%s1037_s17] sm:$0x3]  ;;  %vm496_vm4 = vcmask 0  }
  0x50   : > { %402 = vmatprep.subr.mxu0 %v355_v4  ;;  %361 = vperm.xlu0 %744, %v358_v7   ;;  %v448_v14 = vunpack.c.l.s4 %v884_v13  ;;  %vm443_vm2 = vcmp.gt.f32.partialorder %v352_v24, 0.0  ;;  %v463_v29 = vld [vmem:[%s335_s11] sm:$0x3]  ;;  %p652_p4 = scmp.ne.s32.totalorder %s858_s23, 1 }
  0x51   : > { %403 = vmatpush1.msra.mxu0 %v354_v5  ;;  %v366_v12 = vsub.s32 0, %v365_v11  ;;  %v477_v33 = vsub.s32 1, %v365_v11 }
  0x52   : > { %651 = vmatmul.mubr.msk.f32.vlgmr.msra.gmra.mxu0 %vm368_vm1, %v353_v8  ;;  %v449_v17 = vunpack.c.0.s8 %v448_v14 }
  0x53   : > { %v464_v47 = vld [vmem:[#allocation2] sm:$0x1] }
  0x54   : > { %v452_v22 = vsub.s32 %v449_v17, %v365_v11 }
  0xcb   : > { %v362_v15 = vpop.permute.xlu0 %361 }
  0xcc   : > { %v367_v16 = vrot.slane %v362_v15, %v366_v12 }
 0x112   : > { %v438_v18 = vpop.f32.mrf.mxu0 }
 0x113   : > { %v439_v20 = vadd.f32 %v438_v18, %v367_v16 }
 0x114   : > { %v440_v19 = vpop.f32.mrf.mxu0 }
 0x115   : > { %v441_v21 = vadd.f32 %v440_v19, %v367_v16 }
 0x117   : > { %v446_v23 = vcombine.low %v439_v20, %v441_v21 }
 0x119   : > { %v453_v25 = vrot.slane %v446_v23, %v452_v22 }
 0x11b   : > { %v460_v26 = vrot.slane %v453_v25, %v452_v22 }
 0x11d   : > { %v462_v27 = vsel %vm443_vm2, %v460_v26, 0.0 }
 0x11e   : > { %v465_v28 = vmul.f32 1.442695, %v462_v27  ;;  %v467_v30 = vmul.f32 %v463_v29, %v462_v27 }
 0x120   : > { %745 = vpow2.f32 %v465_v28 }
 0x12d   : > { %v746_v31 = vpop.eup %745 }
 0x12e   : > { %v468_v32 = vsub.f32 %v746_v31, %v467_v30 }
 0x130   : > { %v469_v34 = vmul.f32 %v468_v32, %v352_v24 }
 0x132   : > { %v474_v35 = vrot.slane %v469_v34, %v366_v12  ;;  %v478_v36 = vrot.slane %v469_v34, %v477_v33 }
 0x134   : > { %v482_v37 = vsel %vm481_vm3, %v474_v35, 0.0  ;;  %v483_v38 = vsel %vm481_vm3, %v478_v36, 0.0 }
 0x135   : > { %v484_v39 = vadd.f32 %v483_v38, %v482_v37 }
 0x137   : > { %485 = vadd.xlane.f32.xlu0 %v484_v39 }
 0x1c0   : > { %v486_v40 = vpop.xlane.xlu0 %485 }
 0x1c1   : > { %v487_v41 = vrot.slane %v486_v40, 4 }
 0x1c3   : > { %v488_v42 = vadd.f32 %v487_v41, %v486_v40 }
 0x1c5   : > { %v489_v43 = vrot.slane %v488_v42, 2 }
 0x1c7   : > { %v490_v44 = vadd.f32 %v489_v43, %v488_v42 }
 0x1c9   : > { %v491_v45 = vrot.slane %v490_v44, 1 }
 0x1cb   : > { %v492_v46 = vadd.f32 %v491_v45, %v490_v44 }
 0x1cd   : > { %658 = vpush %v492_v46 }
 0x1fe   : > { %s659_s2 = spop %658  ;;  %501 = sbr.rel (%p652_p4) target bundleno = 647 (0x287), region = 56 }
 0x1ff   : > { %v494_v48 = vstv %s659_s2 }
 0x200   : > { %v495_v49 = vadd.f32 %v494_v48, %v464_v47 }
 0x202   : > { %497 = vst.msk [vmem:[#allocation2] sm:$0x1] %vm496_vm4, %v495_v49 }
 0x203   : > { %v885_v51 = vmov 0  }
 0x204   : > { %747 = vset.pattern.permute.xlu0 %v885_v51 }
 0x209   : > { %v653_v50 = vld [vmem:[#allocation2] ss:$0 sm:$0xff] }
 0x20a   : > { %509 = vperm.xlu0 %747, %v653_v50  }
 0x285   : > { %v510_v52 = vpop.permute.xlu0 %509 }
 0x286   : > { %513 = vst [vmem:[%s1056_s8] sm:$0xff] %v510_v52 }
 0x287 PF: > { %s23_s1 = sadd.s32 1, %s874_s1   ;;  %s1112_s24 = sld [smem:[#allocation10_spill]] }
 0x288   : > { %p20_p5 = scmp.ge.s32.totalorder %s23_s1, 6   ;;  %s1113_s13 = sld [smem:[#allocation11_spill]] }
 0x289   : > { %s1114_s26 = sld [smem:[#allocation12_spill]]  ;;  %s1115_s20 = smov %s850_s21 }
 0x28a   : > { %s1116_s21 = smov %s854_s22  ;;  %s1117_s22 = smov %s992_s16 }
 0x28b   : > { %s1118_s23 = smov %s866_s25  ;;  %22 = sbr.rel (!%p20_p5) target bundleno = 10 (0xa), region = 104 }
 0x28e   : > { %s1119_s25 = smov %s1113_s13 }
 0x290   :  { %533 = vsyncpa [#allocation5], 1 }
 0x291   :  { %535 = vsyncpa [#allocation5 + $0x1], 1 }
 0x292   :  { %536 = vsyncpa [#allocation7], 1 }
 0x293   :  { %538 = vsyncpa [#allocation7 + $0x1], 1 }

</bundles_post_ra>
